<compile_context>
chip_gen: v6e
topology: v6e:2x2x1
jax: 0.10.0
libtpu: 0.0.40
codegen_flags: <defaults>
</compile_context>

<pallas_src>
import functools

import jax
import jax.numpy as jnp
from jax import lax
from jax.experimental import pallas as pl
from jax.experimental.pallas import tpu as pltpu


def _loss_kernel(logits_ref, target_ref, out_ref, *, smoothing, n_rows, tile_n):
    x = logits_ref[...].astype(jnp.float32)      # (tile_n, C) f32 compute
    t = target_ref[...]                          # (tile_n, 1) int32
    tn, c = x.shape

    # Numerically stable log-softmax pieces (no full log_probs materialized).
    m = jnp.max(x, axis=-1, keepdims=True)                              # (tn, 1)
    shifted = x - m                                                     # (tn, C)
    lse = jnp.log(jnp.sum(jnp.exp(shifted), axis=-1, keepdims=True))    # (tn, 1)

    # shifted[row, target[row]] via one masked sum (no gather / true_dist array).
    col = lax.broadcasted_iota(jnp.int32, (tn, c), 1)
    shifted_t = jnp.sum(jnp.where(col == t, shifted, 0.0), axis=-1, keepdims=True)
    sum_shifted = jnp.sum(shifted, axis=-1, keepdims=True)

    off = smoothing / (c - 1)
    on_minus_off = (1.0 - smoothing) - off
    # loss_row = -sum(true_dist * log_probs)
    #          = -( off*(sum(shifted) - C*lse) + (1-smoothing-off)*(shifted[t]-lse) )
    loss = -(off * (sum_shifted - c * lse) + on_minus_off * (shifted_t - lse))  # (tn,1)

    # Mask rows beyond the true batch (ragged last tile).
    row = pl.program_id(0) * tile_n + lax.broadcasted_iota(jnp.int32, (tn, 1), 0)
    loss = jnp.where(row < n_rows, loss, 0.0)

    partial = jnp.sum(loss)
    # Lane-dense store of this tile's partial sum (broadcast across 128 lanes).
    out_ref[...] = jnp.zeros(out_ref.shape, jnp.float32) + partial


def _choose_tile_n(n, c, itemsize, target_bytes=4 * 1024 * 1024):
    """~4 MiB logits tiles, rows a multiple of 16 (safe for bf16 & f32 layouts)."""
    rows = target_bytes // max(1, c * itemsize)
    rows = int(max(16, min(1024, rows)))
    rows = (rows // 16) * 16
    if rows >= n:
        return n  # single block equal to the full batch dim is always legal
    return rows


def label_smoothing_cross_entropy(logits, target, smoothing: float = 0.1,
                                  tile_n: int | None = None):
    """Pallas equivalent of LabelSmoothingCrossEntropyLoss.forward (mean loss)."""
    n, c = logits.shape
    if c < 2:
        raise ValueError("num_classes must be >= 2 for label smoothing")
    # Keep logits in their native dtype in HBM; cast to f32 inside the kernel.
    target2d = target.astype(jnp.int32).reshape(n, 1)

    itemsize = jnp.dtype(logits.dtype).itemsize
    if tile_n is None:
        tile_n = _choose_tile_n(n, c, itemsize)
    num_tiles = pl.cdiv(n, tile_n)

    kernel = functools.partial(
        _loss_kernel, smoothing=float(smoothing), n_rows=n, tile_n=tile_n)

    cost = pl.CostEstimate(
        flops=6 * n * c,
        transcendentals=n * c + n,
        bytes_accessed=n * c * itemsize + n * 4 + num_tiles * 128 * 4,
    )

    partials = pl.pallas_call(
        kernel,
        out_shape=jax.ShapeDtypeStruct((num_tiles, 128), jnp.float32),
        grid=(num_tiles,),
        in_specs=[
            pl.BlockSpec((tile_n, c), lambda i: (i, 0)),   # logits tile
            pl.BlockSpec((tile_n, 1), lambda i: (i, 0)),   # target tile
        ],
        out_specs=pl.BlockSpec((1, 128), lambda i: (i, 0)),
        compiler_params=pltpu.CompilerParams(
            dimension_semantics=("parallel",),
            vmem_limit_bytes=32 * 1024 * 1024,
        ),
        cost_estimate=cost,
    )(logits, target2d)

    # Final mean over the TRUE batch size.
    return jnp.sum(partials[:, 0]) / n


def _reference(logits, target, smoothing=0.1):
    # Pure-JAX reference (mirrors the PyTorch module), computed in f32.
    num_classes = logits.shape[-1]
    log_probs = jax.nn.log_softmax(logits.astype(jnp.float32), axis=-1)
    true_dist = jnp.full_like(log_probs, smoothing / (num_classes - 1))
    true_dist = true_dist.at[jnp.arange(logits.shape[0]), target].set(1.0 - smoothing)
    return jnp.mean(jnp.sum(-true_dist * log_probs, axis=-1))


if __name__ == "__main__":
    key = jax.random.PRNGKey(0)
    k1, k2, k3, k4 = jax.random.split(key, 4)

    # Small shapes consistent with the module: (batch=8, classes=32), f32.
    N, C = 8, 32
    logits = jax.random.normal(k1, (N, C), dtype=jnp.float32)
    target = jax.random.randint(k2, (N,), 0, C, dtype=jnp.int32)

    loss = jax.block_until_ready(label_smoothing_cross_entropy(logits, target, 0.1))
    ref = _reference(logits, target, 0.1)
    assert jnp.allclose(loss, ref, atol=1e-5, rtol=1e-5), (loss, ref)

    # Multi-tile path: ragged last tile + bf16 logits fed straight from HBM.
    N2, C2 = 200, 256
    logits2 = jax.random.normal(k3, (N2, C2), dtype=jnp.float32).astype(jnp.bfloat16)
    target2 = jax.random.randint(k4, (N2,), 0, C2, dtype=jnp.int32)

    loss2 = jax.block_until_ready(
        label_smoothing_cross_entropy(logits2, target2, 0.1, tile_n=64))
    ref2 = _reference(logits2.astype(jnp.float32), target2, 0.1)
    assert jnp.allclose(loss2, ref2, atol=1e-3, rtol=1e-3), (loss2, ref2)

    print("KERNEL_OK")
</pallas_src>

<mosaic_0001>
module attributes {stable_mosaic.version = 11 : i64} {
  func.func @_loss_kernel(%arg0: i32, %arg1: memref<8x32xf32, #tpu.memory_space<vmem>>, %arg2: memref<8x1xi32, #tpu.memory_space<vmem>>, %arg3: memref<1x128xf32, #tpu.memory_space<vmem>>) attributes {dimension_semantics = [#tpu.dimension_semantics<parallel>], iteration_bounds = array<i64: 1>, scalar_prefetch = 0 : i64, scratch_operands = 0 : i64, tpu.core_type = #tpu.core_type<tc>, window_params = [{transform_indices = @transform_0, window_bounds = array<i64: 8, 32>}, {transform_indices = @transform_1, window_bounds = array<i64: 8, 1>}, {transform_indices = @transform_2, window_bounds = array<i64: 1, 128>}]} {
    %c0 = arith.constant 0 : index
    %c0_0 = arith.constant 0 : index
    %0 = vector.load %arg1[%c0, %c0_0] : memref<8x32xf32, #tpu.memory_space<vmem>>, vector<8x32xf32>
    %c0_1 = arith.constant 0 : index
    %c0_2 = arith.constant 0 : index
    %1 = vector.load %arg2[%c0_1, %c0_2] : memref<8x1xi32, #tpu.memory_space<vmem>>, vector<8x1xi32>
    %cst = arith.constant dense<0xFF800000> : vector<8xf32>
    %2 = vector.multi_reduction <maximumf>, %0, %cst [1] : vector<8x32xf32> to vector<8xf32>
    %3 = vector.shape_cast %2 : vector<8xf32> to vector<8x1xf32>
    %4 = vector.broadcast %3 : vector<8x1xf32> to vector<8x32xf32>
    %5 = arith.subf %0, %4 : vector<8x32xf32>
    %6 = math.exp %5 : vector<8x32xf32>
    %cst_3 = arith.constant dense<0.000000e+00> : vector<8xf32>
    %7 = vector.multi_reduction <add>, %6, %cst_3 [1] : vector<8x32xf32> to vector<8xf32>
    %8 = vector.shape_cast %7 : vector<8xf32> to vector<8x1xf32>
    %9 = math.log %8 : vector<8x1xf32>
    %10 = tpu.iota {dimensions = array<i32: 1>} : vector<8x32xi32>
    %11 = vector.broadcast %1 : vector<8x1xi32> to vector<8x32xi32>
    %12 = arith.cmpi eq, %10, %11 : vector<8x32xi32>
    %cst_4 = arith.constant 0.000000e+00 : f32
    %13 = vector.broadcast %cst_4 : f32 to vector<8x32xf32>
    %14 = arith.select %12, %5, %13 : vector<8x32xi1>, vector<8x32xf32>
    %cst_5 = arith.constant dense<0.000000e+00> : vector<8xf32>
    %15 = vector.multi_reduction <add>, %14, %cst_5 [1] : vector<8x32xf32> to vector<8xf32>
    %16 = vector.shape_cast %15 : vector<8xf32> to vector<8x1xf32>
    %cst_6 = arith.constant dense<0.000000e+00> : vector<8xf32>
    %17 = vector.multi_reduction <add>, %5, %cst_6 [1] : vector<8x32xf32> to vector<8xf32>
    %18 = vector.shape_cast %17 : vector<8xf32> to vector<8x1xf32>
    %cst_7 = arith.constant 3.200000e+01 : f32
    %19 = vector.broadcast %cst_7 : f32 to vector<8x1xf32>
    %20 = arith.mulf %19, %9 : vector<8x1xf32>
    %21 = arith.subf %18, %20 : vector<8x1xf32>
    %cst_8 = arith.constant 0.0032258064 : f32
    %22 = vector.broadcast %cst_8 : f32 to vector<8x1xf32>
    %23 = arith.mulf %22, %21 : vector<8x1xf32>
    %24 = arith.subf %16, %9 : vector<8x1xf32>
    %cst_9 = arith.constant 0.896774172 : f32
    %25 = vector.broadcast %cst_9 : f32 to vector<8x1xf32>
    %26 = arith.mulf %25, %24 : vector<8x1xf32>
    %27 = arith.addf %23, %26 : vector<8x1xf32>
    %cst_10 = arith.constant 0.000000e+00 : f32
    %28 = vector.broadcast %cst_10 : f32 to vector<8x1xf32>
    %29 = arith.subf %28, %27 : vector<8x1xf32>
    %c8_i32 = arith.constant 8 : i32
    %30 = arith.muli %arg0, %c8_i32 : i32
    %31 = tpu.iota {dimensions = array<i32: 0>} : vector<8x1xi32>
    %32 = vector.broadcast %30 : i32 to vector<8x1xi32>
    %33 = arith.addi %32, %31 : vector<8x1xi32>
    %c8_i32_11 = arith.constant 8 : i32
    %34 = vector.broadcast %c8_i32_11 : i32 to vector<8x1xi32>
    %35 = arith.cmpi slt, %33, %34 : vector<8x1xi32>
    %cst_12 = arith.constant 0.000000e+00 : f32
    %36 = vector.broadcast %cst_12 : f32 to vector<8x1xf32>
    %37 = arith.select %35, %29, %36 : vector<8x1xi1>, vector<8x1xf32>
    %38 = vector.shape_cast %37 : vector<8x1xf32> to vector<1x8x1xf32>
    %cst_13 = arith.constant dense<0.000000e+00> : vector<1xf32>
    %39 = vector.multi_reduction <add>, %38, %cst_13 [1, 2] : vector<1x8x1xf32> to vector<1xf32>
    %40 = vector.shape_cast %39 : vector<1xf32> to vector<1x1x1xf32>
    %41 = vector.extract %40[0, 0, 0] : f32 from vector<1x1x1xf32>
    %cst_14 = arith.constant 0.000000e+00 : f32
    %42 = vector.broadcast %cst_14 : f32 to vector<1x128xf32>
    %43 = vector.broadcast %41 : f32 to vector<1x128xf32>
    %44 = arith.addf %42, %43 : vector<1x128xf32>
    %c0_15 = arith.constant 0 : index
    %c0_16 = arith.constant 0 : index
    %45 = vector.load %arg3[%c0_15, %c0_16] : memref<1x128xf32, #tpu.memory_space<vmem>>, vector<1x128xf32>
    tpu.vector_store %arg3[%c0_15, %c0_16], %44 {strides = array<i32>} : memref<1x128xf32, #tpu.memory_space<vmem>>, vector<1x128xf32>,
    return
  }
  func.func @transform_0(%arg0: i32) -> (i32, i32) {
    %c0_i32 = arith.constant 0 : i32
    %c0_i32_0 = arith.constant 0 : i32
    return %arg0, %c0_i32 : i32, i32
  }
  func.func @transform_1(%arg0: i32) -> (i32, i32) {
    %c0_i32 = arith.constant 0 : i32
    %c0_i32_0 = arith.constant 0 : i32
    return %arg0, %c0_i32 : i32, i32
  }
  func.func @transform_2(%arg0: i32) -> (i32, i32) {
    %c0_i32 = arith.constant 0 : i32
    %c0_i32_0 = arith.constant 0 : i32
    return %arg0, %c0_i32 : i32, i32
  }
}

</mosaic_0001>

<bundles_post_ra>
// kernel: tpu_custom_call.1
= control target key start
LH: loop header
LB: loop body
LE: loop exit
PB: predicated region body
PF: predicated region fallthrough
CT: control target
= control target key end

     0   :  { %vm14_vm0 = vcmask 261120   ;;  %s142_s0 = inlined_call_operand.vmem [shape: f32[8,32], index: 0, kind: input, shape index: {}]   ;;  %s143_s1 = inlined_call_operand.vmem [shape: s32[8,1], index: 1, kind: input, shape index: {}]   ;;  %s144_s2 = inlined_call_operand.hbm [shape: f32[1,128], index: 2, kind: output, shape index: {}]  }
   0x1   :  { %v12_v0 = vld [vmem:[%s142_s0] sm:$0xff] }
   0x2   :  { %7 = vsyncpa [#allocation3], 0  ;;  %v15_v1 = vsel %vm14_vm0, %v12_v0, -inf  ;;  %v112_v2 = vmov 0   ;;  %v13_v3 = vld [vmem:[%s143_s1] sm:$0xff]  ;;  %v26_v7 = vlaneseq  ;;  %vm53_vm2 = vcmask 7168  }
   0x3   :  { %85 = vset.pattern.permute.xlu0 %v112_v2  ;;  %s113_s0 = smov [#allocation2]  }
   0x4   :  { %16 = vmax.xlane.f32.xlu0 %v15_v1  ;;  %v27_v8 = vand.u32 127, %v26_v7  ;;  %s73_s1 = sshll.u32 %s113_s0, 4  ;;  %s74_s1 = int_to_ptr.vmem [resolvable:$true] %s73_s1 }
   0x5   :  { %s90_s14 = scalar_lea.vmem %s74_s1, 16  ;;  %s94_s15 = scalar_lea.vmem %s74_s1, 32 }
   0x6   :  { %p91_p0 = scmp.ne.s32.totalorder %s74_s1, %s90_s14  ;;  %p95_p1 = scmp.lt.s32.totalorder %s74_s1, %s74_s1 }
   0x7   :  { %p96_p2 = scmp.lt.s32.totalorder %s94_s15, %s90_s14 }
   0x9   :  { %p97_p3 = por %p96_p2, %p95_p1 }
   0xb   :  { %p98_p4 = pnand %p97_p3, %p91_p0 }
  0x1a   :  { %29 = vperm.xlu0 %85, %v13_v3  }
  0x8d   :  { %v17_v4 = vpop.xlane.xlu0 %16 }
  0x8e   :  { %v18_v5 = vsub.f32 %v12_v0, %v17_v4 }
  0x90   :  { %v19_v6 = vmul.f32 1.442695, %v18_v5  ;;  %v36_v14 = vsel %vm14_vm0, %v18_v5, 0.0 }
  0x92   :  { %86 = vpow2.f32 %v19_v6 }
  0x95   :  { %v30_v9 = vpop.permute.xlu0 %29 }
  0x96   :  { %vm31_vm1 = vcmp.eq.s32.totalorder %v27_v8, %v30_v9 }
  0x97   :  { %v32_v12 = vsel %vm31_vm1, %v18_v5, 0.0 }
  0x98   :  { %v33_v13 = vsel %vm14_vm0, %v32_v12, 0.0 }
  0x9f   :  { %v87_v10 = vpop.eup %86 }
  0xa0   :  { %v21_v11 = vsel %vm14_vm0, %v87_v10, 0.0 }
  0xa1   :  { %22 = vadd.xlane.f32.xlu1 %v21_v11 }
  0xa5   :  { %34 = vadd.xlane.f32.xlu1 %v33_v13 }
  0xa9   :  { %37 = vadd.xlane.f32.xlu1 %v36_v14 }
 0x12a   :  { %v23_v15 = vpop.xlane.xlu1 %22 }
 0x12b   :  { %88 = vlog2.f32 %v23_v15 }
 0x12e   :  { %v35_v16 = vpop.xlane.xlu1 %34 }
 0x132   :  { %v38_v21 = vpop.xlane.xlu1 %37 }
 0x138   :  { %v89_v17 = vpop.eup %88 }
 0x139   :  { %v25_v18 = vmul.f32 0.6931472, %v89_v17 }
 0x13b   :  { %v42_v19 = vsub.f32 %v35_v16, %v25_v18  ;;  %v39_v20 = vmul.f32 32.0, %v25_v18 }
 0x13d   :  { %v40_v22 = vsub.f32 %v38_v21, %v39_v20  ;;  %v43_v23 = vmul.f32 0.8967742, %v42_v19 }
 0x13f   :  { %v41_v24 = vmul.f32 0.0032258064, %v40_v22 }
 0x141   :  { %v44_v25 = vadd.f32 %v43_v23, %v41_v24 }
 0x143   :  { %v45_v26 = vsub.f32 0.0, %v44_v25 }
 0x145   :  { %v54_v27 = vsel %vm53_vm2, %v45_v26, 0.0 }
 0x146   :  { %55 = vadd.xlane.f32.xlu1 %v54_v27 }
 0x1cf   :  { %v56_v28 = vpop.xlane.xlu1 %55 }
 0x1d0   :  { %v57_v29 = vrot.slane %v56_v28, 4 }
 0x1d2   :  { %v58_v30 = vadd.f32 %v57_v29, %v56_v28 }
 0x1d4   :  { %v59_v31 = vrot.slane %v58_v30, 2 }
 0x1d6   :  { %v60_v32 = vadd.f32 %v59_v31, %v58_v30 }
 0x1d8   :  { %v61_v33 = vrot.slane %v60_v32, 1 }
 0x1da   :  { %v62_v34 = vadd.f32 %v61_v33, %v60_v32 }
 0x1dc   :  { %81 = vpush %v62_v34 }
 0x20d   :  { %s82_s13 = spop %81 }
 0x20e   :  { %v64_v35 = vstv %s82_s13 }
 0x20f   :  { %66 = vst [vmem:[#allocation2] sm:$0x1] %v64_v35 }
 0x210   :  { %101 = shalt.err (!%p98_p4)
}
 0x211   :  { %76 = dma.vmem_to_hbm [thread:$0]  %s74_s1, 16, %s144_s2, [#allocation3]  }
 0x212   :  { %110 = dma.done.wait [#allocation3], 16  }
 0x213   :  { %111 = vsyncadd [#allocation3], 4294967280 }
 0x214   :  { %80 = vsyncpa [#allocation3], 1 }

</bundles_post_ra>
